<compile_context>
chip_gen: v7x
topology: tpu7x:2x2x1
jax: 0.10.0
libtpu: 0.0.40
codegen_flags: <defaults>
</compile_context>

<pallas_src>
import functools

import jax
import jax.numpy as jnp
from jax import lax
from jax.experimental import pallas as pl
from jax.experimental.pallas import tpu as pltpu


def _make_kernel(tm, max_pos, fast_math):
    """Build the NT-Xent row-tile kernel (static tile height / table width)."""

    def kernel(xr_ref, xc_ref, pos_ref, stats_ref, out_ref):
        n = xc_ref.shape[1]

        # Gram tile on the MXU.  Rows/columns are already cosine-normalized with
        # 1/temperature folded in, and the columns operand is pre-transposed to
        # [D, N], so this is a canonical [tm,D] x [D,N] matmul (no relayout).
        z = jnp.dot(xr_ref[...], xc_ref[...],
                    preferred_element_type=jnp.float32)            # [tm, N] f32

        # Rebuild the {0,1} target tile from the per-row positive-column table
        # (includes the forced-positive diagonal); -1 padding never matches.
        col_ids = lax.broadcasted_iota(jnp.int32, (tm, n), 1)
        hit = col_ids == pos_ref[:, 0:1]
        for k in range(1, max_pos):                                 # static, tiny
            hit = jnp.logical_or(hit, col_ids == pos_ref[:, k:k + 1])
        tgt = hit.astype(jnp.float32)

        num_pos = stats_ref[:, 0:1]          # positives per row (incl. diagonal)
        rowsum_z = stats_ref[:, 1:2]         # precomputed sum_j z[i, j]
        z_diag = stats_ref[:, 2:3]           # z[i, i]  (= |x_hat_i|^2 / temp)

        # Stable softplus(-z) == -log(sigmoid(z)): BCE loss of a positive pair.
        sp_neg = jnp.maximum(-z, 0.0) + jnp.log(1.0 + jnp.exp(-jnp.abs(z)))
        diag_sp = (jnp.maximum(-z_diag, 0.0)
                   + jnp.log(1.0 + jnp.exp(-jnp.abs(z_diag))))

        if fast_math:
            # 1/temperature <= 90  =>  |z| << 100, PyTorch's 100-clamp can never
            # bind, and softplus(z) = softplus(-z) + z, so the negative-pair sum
            # reuses sp_neg:  sum_neg = sum(sp) - sum(t*sp) + sum(z) - sum(t*z).
            sum_sp = jnp.sum(sp_neg, axis=1, keepdims=True)
            pos_sp = jnp.sum(tgt * sp_neg, axis=1, keepdims=True)
            pos_z = jnp.sum(tgt * z, axis=1, keepdims=True)
            # torch sets xcs[i,i]=+inf -> that positive contributes exactly 0,
            # but still counts toward num_pos; subtract its finite matmul value.
            loss_pos = pos_sp - diag_sp
            loss_neg = (sum_sp - pos_sp) + (rowsum_z - pos_z)
        else:
            # General path: clamp each active log term at 100 like
            # F.binary_cross_entropy does.
            sp_neg_c = jnp.minimum(sp_neg, 100.0)
            sp_pos_c = jnp.minimum(sp_neg + z, 100.0)
            loss_pos = (jnp.sum(tgt * sp_neg_c, axis=1, keepdims=True)
                        - jnp.minimum(diag_sp, 100.0))
            loss_neg = jnp.sum((1.0 - tgt) * sp_pos_c, axis=1, keepdims=True)

        # num_neg == 0 (a fully-positive row) gives NaN, exactly like PyTorch.
        num_neg = float(n) - num_pos
        out_ref[...] = loss_pos / num_pos + loss_neg / num_neg

    return kernel


@functools.partial(
    jax.jit,
    static_argnames=("tm", "max_pos", "fast_math", "mm_bf16", "vmem_limit"))
def _ntxent_forward(x, pairs, temperature, *, tm, max_pos, fast_math, mm_bf16,
                    vmem_limit):
    if x.ndim == 4:
        x = jnp.mean(x, axis=(2, 3))                 # NCHW -> [N, C]
    x = x.astype(jnp.float32)
    n, d = x.shape

    # ---- one-time cosine normalization with temperature folded in ----------
    # scale_i = 1/(max(|x_i|,1e-4)*sqrt(temp)) so (x_i*s_i)·(x_j*s_j) =
    # cos(x_i,x_j)/temp.  (torch.cosine_similarity uses a 1e-8 per-norm eps;
    # this only differs for essentially-zero feature vectors.)
    temp = jnp.asarray(temperature, jnp.float32)
    sq = jnp.sum(x * x, axis=1, keepdims=True)
    xn = x * lax.rsqrt(jnp.maximum(sq, 1e-8) * temp)

    # Pad features to a multiple of 128 lanes (zero padding is a no-op for the
    # dot products / norms) so the MXU K dimension is fully utilized.
    dp = ((d + 127) // 128) * 128
    if dp != d:
        xn = jnp.pad(xn, ((0, 0), (0, dp - d)))

    mm_dtype = jnp.bfloat16 if mm_bf16 else jnp.float32
    x_rows = xn.astype(mm_dtype)                     # [N, Dp]  (row tiles)
    x_cols = x_rows.T                                # [Dp, N]  (resident RHS)

    # Per-row scalars, precomputed once from the exact values fed to the MXU.
    xq = x_rows.astype(jnp.float32)
    z_diag = jnp.sum(xq * xq, axis=1, keepdims=True)                 # [N, 1]
    rowsum_z = xq @ jnp.sum(xq, axis=0, keepdims=True).T             # [N, 1]

    # num_pos = row-sums of the (deduplicated) dense target, without ever
    # materializing it: duplicate (i, j) pairs count once, as in the PyTorch
    # scatter.  NOTE: flat row*n+col ids assume n < ~46k (int32).
    rows, cols = pairs[:, 0], pairs[:, 1]
    p_tot = pairs.shape[0]
    flat = rows * n + cols
    flat_s = jnp.sort(flat)
    first = jnp.concatenate([jnp.ones((1,), bool), flat_s[1:] != flat_s[:-1]])
    num_pos = jnp.zeros((n, 1), jnp.float32).at[flat_s // n, 0].add(
        first.astype(jnp.float32))

    # Per-row table of positive column indices (padded with -1), so the kernel
    # can rebuild its target tile with max_pos compares instead of streaming a
    # dense NxN target from HBM.
    order = jnp.argsort(rows)
    rs, cs = rows[order], cols[order]
    rank = (jnp.arange(p_tot, dtype=jnp.int32)
            - jnp.searchsorted(rs, rs, side="left").astype(jnp.int32))
    pos_cols = jnp.full((n, max_pos), -1, jnp.int32).at[rs, rank].set(cs)

    stats = jnp.concatenate([num_pos, rowsum_z, z_diag], axis=1)     # [N, 3]

    kernel = _make_kernel(tm, max_pos, fast_math)
    per_sample = pl.pallas_call(
        kernel,
        out_shape=jax.ShapeDtypeStruct((n, 1), jnp.float32),
        grid_spec=pltpu.PrefetchScalarGridSpec(
            num_scalar_prefetch=0,
            grid=(n // tm,),
            in_specs=[
                pl.BlockSpec((tm, dp), lambda i: (i, 0)),       # row tile of x_hat
                # Resident, constant-index columns operand ([Dp, N]).
                # TODO(synk): on very large N, pipeline_mode=pl.Buffered(1) here
                # would stop it being double-buffered and halve its VMEM cost.
                pl.BlockSpec((dp, n), lambda i: (0, 0)),
                pl.BlockSpec((tm, max_pos), lambda i: (i, 0)),  # positive cols
                pl.BlockSpec((tm, 3), lambda i: (i, 0)),        # per-row stats
            ],
            out_specs=pl.BlockSpec((tm, 1), lambda i: (i, 0)),
        ),
        compiler_params=pltpu.CompilerParams(
            # Disjoint output rows per grid step -> megacore-parallel on v7x.
            dimension_semantics=("parallel",),
            vmem_limit_bytes=vmem_limit),
    )(x_rows, x_cols, pos_cols, stats)

    return jnp.mean(per_sample)


def _pick_tile(n, vmem_bytes):
    """Largest row tile that divides N, respecting the chip's VMEM budget."""
    cap = 128 if (vmem_bytes < 96 * 2**20 and n >= 4096) else 256
    for t in (256, 128, 64, 32, 16, 8):
        if t <= cap and n % t == 0:
            return t
    return n        # small / odd N: single tile (block == full array is legal)


def ntxent_loss(x, pos_indices, temperature):
    """JAX/Pallas equivalent of NTXentLoss.forward.

    Runs eagerly at the top level (tile size and positive-table width are
    concrete, data-derived static kernel parameters); the heavy path is jitted.
    """
    x = jnp.asarray(x)
    assert x.ndim in (2, 4)
    n = x.shape[0]
    d = x.shape[1]          # post-pooling feature dim in both the 2-D/4-D case

    # Append the forced-positive diagonal pairs, exactly like the module.
    ar = jnp.arange(n, dtype=jnp.int32)
    pairs = jnp.concatenate(
        [jnp.asarray(pos_indices, jnp.int32), jnp.stack([ar, ar], axis=1)],
        axis=0)

    # ---- static decisions ---------------------------------------------------
    try:
        t_val = float(temperature)
        fast_math = (t_val > 0.0) and (1.0 / t_val <= 90.0)
    except Exception:                       # traced temperature: take safe path
        fast_math = False

    # Width of the per-row positive-column table (counts duplicates, so it is
    # always a valid upper bound for the scatter ranks used above).
    max_pos = int(jnp.max(jnp.zeros((n,), jnp.int32).at[pairs[:, 0]].add(1)))

    try:
        vmem_bytes = int(pltpu.get_tpu_info().vmem_capacity_bytes)
    except Exception:
        vmem_bytes = 64 * 2**20             # conservative (v7x-sized) default
    tm = _pick_tile(n, vmem_bytes)
    vmem_limit = int(min(vmem_bytes * 7 // 8, 100 * 2**20))

    # bf16 Gram operands only when D is large enough for the MXU rate / VMEM
    # footprint to matter; small-D problems stay exactly f32.
    mm_bf16 = d >= 256

    return _ntxent_forward(
        x, pairs, jnp.asarray(temperature, jnp.float32),
        tm=tm, max_pos=max_pos, fast_math=fast_math, mm_bf16=mm_bf16,
        vmem_limit=vmem_limit)


def _reference_loss(x, pos_indices, temperature):
    """Pure-JAX transcription of the PyTorch module (validation only)."""
    x = jnp.asarray(x, jnp.float32)
    if x.ndim == 4:
        x = jnp.mean(x, axis=(2, 3))
    n = x.shape[0]
    ar = jnp.arange(n)
    target = jnp.zeros((n, n), jnp.float32)
    target = target.at[pos_indices[:, 0], pos_indices[:, 1]].set(1.0)
    target = target.at[ar, ar].set(1.0)
    norms = jnp.maximum(jnp.linalg.norm(x, axis=1), 1e-4)
    xcs = (x @ x.T) / (norms[:, None] * norms[None, :])
    xcs = xcs.at[ar, ar].set(jnp.inf)
    p = jax.nn.sigmoid(xcs / temperature)
    loss = -(target * jnp.maximum(jnp.log(p), -100.0)
             + (1.0 - target) * jnp.maximum(jnp.log(1.0 - p), -100.0))
    loss_pos = jnp.sum(jnp.where(target > 0, loss, 0.0), axis=1)
    loss_neg = jnp.sum(jnp.where(target > 0, 0.0, loss), axis=1)
    num_pos = jnp.sum(target, axis=1)
    num_neg = n - num_pos
    return jnp.mean(loss_pos / num_pos + loss_neg / num_neg)


if __name__ == "__main__":
    key = jax.random.PRNGKey(0)

    # Small shapes consistent with the module: N=8 augmented views, 4 channels,
    # 16x16 spatial (NCHW input is mean-pooled over H, W).
    N, C, H, W = 8, 4, 16, 16
    x = jax.random.normal(key, (N, C, H, W), dtype=jnp.float32)

    # Standard NT-Xent pairing: (i, i + N/2) and (i + N/2, i).
    half = N // 2
    fwd = jnp.stack([jnp.arange(half), jnp.arange(half) + half], axis=1)
    bwd = jnp.stack([jnp.arange(half) + half, jnp.arange(half)], axis=1)
    pos_indices = jnp.concatenate([fwd, bwd], axis=0).astype(jnp.int32)

    temperature = 0.1

    loss = ntxent_loss(x, pos_indices, temperature)
    jax.block_until_ready(loss)

    ref = _reference_loss(x, pos_indices, temperature)
    assert jnp.isfinite(loss), f"non-finite loss: {loss}"
    assert abs(float(loss) - float(ref)) <= 2e-3 * abs(float(ref)) + 1e-4, (
        float(loss), float(ref))

    print("KERNEL_OK")
</pallas_src>

<mosaic_0001>
module attributes {stable_mosaic.version = 11 : i64} {
  func.func private @main(%arg0: i32) attributes {dimension_semantics = [#tpu.dimension_semantics<core_parallel>], iteration_bounds = array<i64: 2>, tpu.core_type = #tpu.core_type<sc_scalar_subcore>, window_params = []} {
    return
  }
}

module attributes {stable_mosaic.version = 11 : i64} {
  func.func private @main(%arg0: i32) attributes {dimension_semantics = [#tpu.dimension_semantics<core_parallel>], iteration_bounds = array<i64: 2>, tpu.core_type = #tpu.core_type<sc_scalar_subcore>, window_params = []} {
    return
  }
}

module attributes {stable_mosaic.version = 11 : i64} {
  func.func @kernel(%arg0: i32, %arg1: memref<8x128xf32, #tpu.memory_space<vmem>>, %arg2: memref<128x8xf32, #tpu.memory_space<vmem>>, %arg3: memref<8x2xi32, #tpu.memory_space<vmem>>, %arg4: memref<8x3xf32, #tpu.memory_space<vmem>>, %arg5: memref<8x1xf32, #tpu.memory_space<vmem>>) attributes {dimension_semantics = [#tpu.dimension_semantics<parallel>], iteration_bounds = array<i64: 1>, scalar_prefetch = 0 : i64, scratch_operands = 0 : i64, tpu.core_type = #tpu.core_type<tc>, window_params = [{transform_indices = @transform_0, window_bounds = array<i64: 8, 128>}, {pipeline_mode = #tpu.pipeline_mode<synchronous>, transform_indices = @transform_1, window_bounds = array<i64: 128, 8>}, {transform_indices = @transform_2, window_bounds = array<i64: 8, 2>}, {transform_indices = @transform_3, window_bounds = array<i64: 8, 3>}, {transform_indices = @transform_4, window_bounds = array<i64: 8, 1>}]} {
    %c0 = arith.constant 0 : index
    %c0_0 = arith.constant 0 : index
    %0 = vector.load %arg1[%c0, %c0_0] : memref<8x128xf32, #tpu.memory_space<vmem>>, vector<8x128xf32>
    %c0_1 = arith.constant 0 : index
    %c0_2 = arith.constant 0 : index
    %1 = vector.load %arg2[%c0_1, %c0_2] : memref<128x8xf32, #tpu.memory_space<vmem>>, vector<128x8xf32>
    %cst = arith.constant dense<0.000000e+00> : vector<8x8xf32>
    %2 = tpu.matmul %0, %1, %cst {dimension_numbers = #tpu.dot_dimension_numbers<[1], [0], [0], [1], [0, 0, 1, 1], [], []>} : vector<8x128xf32>, vector<128x8xf32>, vector<8x8xf32> -> vector<8x8xf32>
    %3 = tpu.iota {dimensions = array<i32: 1>} : vector<8x8xi32>
    %c0_3 = arith.constant 0 : index
    %c0_4 = arith.constant 0 : index
    %4 = vector.load %arg3[%c0_3, %c0_4] : memref<8x2xi32, #tpu.memory_space<vmem>>, vector<8x1xi32>
    %5 = vector.broadcast %4 : vector<8x1xi32> to vector<8x8xi32>
    %6 = arith.cmpi eq, %3, %5 : vector<8x8xi32>
    %c0_5 = arith.constant 0 : index
    %c1 = arith.constant 1 : index
    %7 = vector.load %arg3[%c0_5, %c1] : memref<8x2xi32, #tpu.memory_space<vmem>>, vector<8x1xi32>
    %8 = vector.broadcast %7 : vector<8x1xi32> to vector<8x8xi32>
    %9 = arith.cmpi eq, %3, %8 : vector<8x8xi32>
    %10 = arith.ori %6, %9 : vector<8x8xi1>
    %11 = arith.extui %10 : vector<8x8xi1> to vector<8x8xi32>
    %12 = arith.sitofp %11 : vector<8x8xi32> to vector<8x8xf32>
    %c0_6 = arith.constant 0 : index
    %c0_7 = arith.constant 0 : index
    %13 = vector.load %arg4[%c0_6, %c0_7] : memref<8x3xf32, #tpu.memory_space<vmem>>, vector<8x1xf32>
    %c0_8 = arith.constant 0 : index
    %c1_9 = arith.constant 1 : index
    %14 = vector.load %arg4[%c0_8, %c1_9] : memref<8x3xf32, #tpu.memory_space<vmem>>, vector<8x1xf32>
    %c0_10 = arith.constant 0 : index
    %c2 = arith.constant 2 : index
    %15 = vector.load %arg4[%c0_10, %c2] : memref<8x3xf32, #tpu.memory_space<vmem>>, vector<8x1xf32>
    %cst_11 = arith.constant 0.000000e+00 : f32
    %16 = vector.broadcast %cst_11 : f32 to vector<8x8xf32>
    %17 = arith.subf %16, %2 : vector<8x8xf32>
    %cst_12 = arith.constant 0.000000e+00 : f32
    %18 = vector.broadcast %cst_12 : f32 to vector<8x8xf32>
    %19 = arith.maximumf %17, %18 : vector<8x8xf32>
    %20 = math.absf %2 : vector<8x8xf32>
    %cst_13 = arith.constant 0.000000e+00 : f32
    %21 = vector.broadcast %cst_13 : f32 to vector<8x8xf32>
    %22 = arith.subf %21, %20 : vector<8x8xf32>
    %23 = math.exp %22 : vector<8x8xf32>
    %cst_14 = arith.constant 1.000000e+00 : f32
    %24 = vector.broadcast %cst_14 : f32 to vector<8x8xf32>
    %25 = arith.addf %24, %23 : vector<8x8xf32>
    %26 = math.log %25 : vector<8x8xf32>
    %27 = arith.addf %19, %26 : vector<8x8xf32>
    %cst_15 = arith.constant 0.000000e+00 : f32
    %28 = vector.broadcast %cst_15 : f32 to vector<8x1xf32>
    %29 = arith.subf %28, %15 : vector<8x1xf32>
    %cst_16 = arith.constant 0.000000e+00 : f32
    %30 = vector.broadcast %cst_16 : f32 to vector<8x1xf32>
    %31 = arith.maximumf %29, %30 : vector<8x1xf32>
    %32 = math.absf %15 : vector<8x1xf32>
    %cst_17 = arith.constant 0.000000e+00 : f32
    %33 = vector.broadcast %cst_17 : f32 to vector<8x1xf32>
    %34 = arith.subf %33, %32 : vector<8x1xf32>
    %35 = math.exp %34 : vector<8x1xf32>
    %cst_18 = arith.constant 1.000000e+00 : f32
    %36 = vector.broadcast %cst_18 : f32 to vector<8x1xf32>
    %37 = arith.addf %36, %35 : vector<8x1xf32>
    %38 = math.log %37 : vector<8x1xf32>
    %39 = arith.addf %31, %38 : vector<8x1xf32>
    %cst_19 = arith.constant dense<0.000000e+00> : vector<8xf32>
    %40 = vector.multi_reduction <add>, %27, %cst_19 [1] : vector<8x8xf32> to vector<8xf32>
    %41 = vector.shape_cast %40 : vector<8xf32> to vector<8x1xf32>
    %42 = arith.mulf %12, %27 : vector<8x8xf32>
    %cst_20 = arith.constant dense<0.000000e+00> : vector<8xf32>
    %43 = vector.multi_reduction <add>, %42, %cst_20 [1] : vector<8x8xf32> to vector<8xf32>
    %44 = vector.shape_cast %43 : vector<8xf32> to vector<8x1xf32>
    %45 = arith.mulf %12, %2 : vector<8x8xf32>
    %cst_21 = arith.constant dense<0.000000e+00> : vector<8xf32>
    %46 = vector.multi_reduction <add>, %45, %cst_21 [1] : vector<8x8xf32> to vector<8xf32>
    %47 = vector.shape_cast %46 : vector<8xf32> to vector<8x1xf32>
    %48 = arith.subf %44, %39 : vector<8x1xf32>
    %49 = arith.subf %41, %44 : vector<8x1xf32>
    %50 = arith.subf %14, %47 : vector<8x1xf32>
    %51 = arith.addf %49, %50 : vector<8x1xf32>
    %cst_22 = arith.constant 8.000000e+00 : f32
    %52 = vector.broadcast %cst_22 : f32 to vector<8x1xf32>
    %53 = arith.subf %52, %13 : vector<8x1xf32>
    %54 = arith.divf %48, %13 : vector<8x1xf32>
    %55 = arith.divf %51, %53 : vector<8x1xf32>
    %56 = arith.addf %54, %55 : vector<8x1xf32>
    %c0_23 = arith.constant 0 : index
    %c0_24 = arith.constant 0 : index
    %57 = vector.load %arg5[%c0_23, %c0_24] : memref<8x1xf32, #tpu.memory_space<vmem>>, vector<8x1xf32>
    tpu.vector_store %arg5[%c0_23, %c0_24], %56 {strides = array<i32>} : memref<8x1xf32, #tpu.memory_space<vmem>>, vector<8x1xf32>,
    return
  }
  func.func @transform_0(%arg0: i32) -> (i32, i32) {
    %c0_i32 = arith.constant 0 : i32
    %c0_i32_0 = arith.constant 0 : i32
    return %arg0, %c0_i32 : i32, i32
  }
  func.func @transform_1(%arg0: i32) -> (i32, i32) {
    %c0_i32 = arith.constant 0 : i32
    %c0_i32_0 = arith.constant 0 : i32
    %c0_i32_1 = arith.constant 0 : i32
    return %c0_i32, %c0_i32_0 : i32, i32
  }
  func.func @transform_2(%arg0: i32) -> (i32, i32) {
    %c0_i32 = arith.constant 0 : i32
    %c0_i32_0 = arith.constant 0 : i32
    return %arg0, %c0_i32 : i32, i32
  }
  func.func @transform_3(%arg0: i32) -> (i32, i32) {
    %c0_i32 = arith.constant 0 : i32
    %c0_i32_0 = arith.constant 0 : i32
    return %arg0, %c0_i32 : i32, i32
  }
  func.func @transform_4(%arg0: i32) -> (i32, i32) {
    %c0_i32 = arith.constant 0 : i32
    %c0_i32_0 = arith.constant 0 : i32
    return %arg0, %c0_i32 : i32, i32
  }
}

</mosaic_0001>

<bundles_post_ra>
// kernel: custom-call.2
= control target key start
LH: loop header
LB: loop body
LE: loop exit
PB: predicated region body
PF: predicated region fallthrough
CT: control target
= control target key end

     0   :  { %s6_s0 = inlined_call_operand.vmem [shape: u32[16], index: 0, kind: output, shape index: {}]  }

// kernel: _ntxent_forward.1
= control target key start
LH: loop header
LB: loop body
LE: loop exit
PB: predicated region body
PF: predicated region fallthrough
CT: control target
= control target key end

     0   :  { %v282_v0 = vmov 0.0|0.0   ;;  %vm283_vm0 = vmmov 0   ;;  %v284_v4 = vmov 0.0   ;;  %v285_v7 = vmov 0   ;;  %s287_s26 = smov 1   ;;  %s379_s1 = inlined_call_operand.vmem [shape: f32[128,8], index: 1, kind: input, shape index: {}]   ;;  %s380_s2 = inlined_call_operand.vmem [shape: s32[8,2], index: 2, kind: input, shape index: {}]   ;;  %s381_s0 = inlined_call_operand.vmem [shape: f32[8,128], index: 0, kind: input, shape index: {}]   ;;  %s382_s3 = inlined_call_operand.vmem [shape: f32[8,3], index: 3, kind: input, shape index: {}]   ;;  %s383_s4 = inlined_call_operand.vmem [shape: f32[8,1], index: 4, kind: output, shape index: {}]  }
   0x1   :  { %236 = vmatprep.subr.bf16.mxu0 %v282_v0  ;;  %v18_v1 = vld [vmem:[%s379_s1] sm:$0xff]  ;;  %v19_v2 = vld [vmem:[%s379_s1 + $0x8] sm:$0xff]  ;;  %v20_v3 = vld [vmem:[%s379_s1 + $0x10] sm:$0xff]  ;;  %233 = vmatprep.mubr.msk.f32.mxu0 %vm283_vm0, %v284_v4  ;;  %v286_v15 = vmov 1   ;;  %v104_v40 = vlaneseq  ;;  %vm139_vm4 = vcmask 64512   ;;  %vm177_vm5 = vcmask 7168  }
   0x2   :  { %v237_v5 = vpack.c.bf16 %v19_v2, %v18_v1  ;;  %v21_v6 = vld [vmem:[%s379_s1 + $0x18] sm:$0xff]  ;;  %268 = vset.pattern.permute.xlu0 %v285_v7  ;;  %v22_v9 = vld [vmem:[%s379_s1 + $0x20] sm:$0xff]  ;;  %v23_v10 = vld [vmem:[%s379_s1 + $0x28] sm:$0xff] }
   0x3   :  { %v240_v8 = vpack.c.bf16 %v21_v6, %v20_v3  ;;  %v106_v11 = vld [vmem:[%s380_s2] sm:$0xff]  ;;  %v243_v12 = vpack.c.bf16 %v23_v10, %v22_v9  ;;  %v24_v13 = vld [vmem:[%s379_s1 + $0x30] sm:$0xff]  ;;  %v25_v14 = vld [vmem:[%s379_s1 + $0x38] sm:$0xff]  ;;  %v105_v41 = vand.u32 127, %v104_v40 }
   0x4   :  { %238 = vmatpush3.bf16.msra.mxu0 %v237_v5  ;;  %108 = vperm.xlu0 %268, %v106_v11   ;;  %v246_v16 = vpack.c.bf16 %v25_v14, %v24_v13  ;;  %v26_v17 = vld [vmem:[%s379_s1 + $0x40] sm:$0xff]  ;;  %v27_v18 = vld [vmem:[%s379_s1 + $0x48] sm:$0xff]  ;;  %v28_v20 = vld [vmem:[%s379_s1 + $0x50] sm:$0xff] }
   0x5   :  { %239 = vmatprep.subr.bf16.mxu0 %v282_v0  ;;  %v249_v19 = vpack.c.bf16 %v27_v18, %v26_v17  ;;  %v29_v21 = vld [vmem:[%s379_s1 + $0x58] sm:$0xff]  ;;  %v30_v23 = vld [vmem:[%s379_s1 + $0x60] sm:$0xff]  ;;  %v31_v24 = vld [vmem:[%s379_s1 + $0x68] sm:$0xff] }
   0x6   :  { %v252_v22 = vpack.c.bf16 %v29_v21, %v28_v20  ;;  %v255_v25 = vpack.c.bf16 %v31_v24, %v30_v23  ;;  %v32_v26 = vld [vmem:[%s379_s1 + $0x70] sm:$0xff]  ;;  %v33_v27 = vld [vmem:[%s379_s1 + $0x78] sm:$0xff]  ;;  %v17_v29 = vld [vmem:[%s381_s0] sm:$0xff]  ;;  %s288_s0 = smov 2   ;;  %s289_s1 = smov 126  }
   0x7   :  { %v258_v28 = vpack.c.bf16 %v33_v27, %v32_v26  ;;  %v118_v30 = vld [vmem:[%s382_s3] sm:$0xff] }
   0x8   :  { %241 = vmatpush3.bf16.msra.mxu0 %v240_v8  ;;  %269 = vset.pattern.permute.xlu0 %v286_v15  ;;  %v155_v31 = vsub.f32 8.0, %v118_v30  ;;  %v131_v63 = vand.u32 2147483647, %v118_v30  ;;  %v129_v5 = vsub.f32 0.0, %v118_v30 }
   0x9   :  { %242 = vmatprep.subr.bf16.mxu0 %v282_v0  ;;  %112 = vperm.xlu0 %269, %v106_v11  }
   0xa   :  { %v130_v7 = vmax.f32 %v129_v5, 0.0 }
   0xc   :  { %244 = vmatpush3.bf16.msra.mxu0 %v243_v12 }
   0xd   :  { %245 = vmatprep.subr.bf16.mxu0 %v282_v0  ;;  %163 = vrot.lane.b32.xlu0 %v155_v31, %s287_s26 }
  0x10   :  { %247 = vmatpush3.bf16.msra.mxu0 %v246_v16 }
  0x11   :  { %248 = vmatprep.subr.bf16.mxu0 %v282_v0 }
  0x14   :  { %250 = vmatpush3.bf16.msra.mxu0 %v249_v19 }
  0x15   :  { %251 = vmatprep.subr.bf16.mxu0 %v282_v0 }
  0x18   :  { %253 = vmatpush3.bf16.msra.mxu0 %v252_v22 }
  0x19   :  { %254 = vmatprep.subr.bf16.mxu0 %v282_v0 }
  0x1c   :  { %256 = vmatpush3.bf16.msra.mxu0 %v255_v25 }
  0x1d   :  { %257 = vmatprep.subr.bf16.mxu0 %v282_v0  ;;  %v132_v0 = vsub.f32 0.0, %v131_v63 }
  0x1f   :  { %v133_v1 = vmul.f32 1.442695, %v132_v0 }
  0x20   :  { %259 = vmatpush3.bf16.msra.mxu0 %v258_v28 }
  0x23   :  { %234 = vmatmul.mubr.f32.vlgmr.msra.gmra.mrb[0].mxu0 %v17_v29 }
  0x83   :  { %v109_v39 = vpop.permute.xlu0 %108 }
  0x84   :  { %vm110_vm1 = vcmp.eq.s32.totalorder %v105_v41, %v109_v39 }
  0x88   :  { %v113_v42 = vpop.permute.xlu0 %112 }
  0x89   :  { %vm114_vm2 = vcmp.eq.s32.totalorder %v105_v41, %v113_v42 }
  0x8a   :  { %vm115_vm3 = vmor %vm110_vm1, %vm114_vm2 }
  0x8b   :  { %v183_v48 = vsel %vm115_vm3, 1.0, %v284_v4 }
  0x8c   :  { %v164_v54 = vpop.permute.xlu0 %163 }
  0xf6   :  { %v100_v32 = vpop.f32.mrb[0].mxu0 }
  0xf7   :  { %v121_v33 = vand.u32 2147483647, %v100_v32  ;;  %v235_v34 = vpop.f32.mrb[1].mxu0  ;;  %v119_v43 = vsub.f32 0.0, %v100_v32  ;;  %v147_v52 = vmul.f32 %v183_v48, %v100_v32 }
  0xf9   :  { %v122_v35 = vsub.f32 0.0, %v121_v33  ;;  %v120_v45 = vmax.f32 %v119_v43, 0.0  ;;  %v148_v53 = vsel %vm139_vm4, %v147_v52, 0.0 }
  0xfb   :  { %v123_v36 = vmul.f32 1.442695, %v122_v35 }
  0xfd   :  { %270 = vpow2.f32 %v123_v36 }
 0x107   :  { %v271_v37 = vpop.eup %270 }
 0x108   :  { %v125_v38 = vadd.f32 1.0, %v271_v37 }
 0x10a   :  { %272 = vlog2.f32 %v125_v38 }
 0x10b   :  { %274 = vrcp.f32 %v164_v54 }
 0x10c   :  { %276 = vpow2.f32 %v133_v1 }
 0x114   :  { %v273_v44 = vpop.eup %272 }
 0x115   :  { %v127_v46 = vmul.f32 0.6931472, %v273_v44  ;;  %v275_v60 = vpop.eup %274 }
 0x116   :  { %v277_v2 = vpop.eup %276 }
 0x117   :  { %v128_v47 = vadd.f32 %v127_v46, %v120_v45  ;;  %v135_v3 = vadd.f32 1.0, %v277_v2 }
 0x119   :  { %v140_v49 = vsel %vm139_vm4, %v128_v47, 0.0  ;;  %v143_v50 = vmul.f32 %v183_v48, %v128_v47  ;;  %278 = vlog2.f32 %v135_v3 }
 0x11a   :  { %141 = vadd.xlane.f32.xlu1 %v140_v49 }
 0x11b   :  { %v144_v51 = vsel %vm139_vm4, %v143_v50, 0.0 }
 0x11e   :  { %145 = vadd.xlane.f32.xlu1 %v144_v51 }
 0x122   :  { %149 = vadd.xlane.f32.xlu1 %v148_v53 }
 0x123   :  { %v279_v6 = vpop.eup %278 }
 0x124   :  { %v137_v8 = vmul.f32 0.6931472, %v279_v6 }
 0x126   :  { %v138_v9 = vadd.f32 %v137_v8, %v130_v7 }
 0x133   :  { %157 = vrot.lane.b32.xlu1 %v118_v30, %s288_s0 }
 0x1a7   :  { %v142_v55 = vpop.xlane.xlu1 %141 }
 0x1ab   :  { %v146_v56 = vpop.xlane.xlu1 %145 }
 0x1ac   :  { %v152_v58 = vsub.f32 %v142_v55, %v146_v56  ;;  %v151_v11 = vsub.f32 %v146_v56, %v138_v9 }
 0x1af   :  { %v150_v57 = vpop.xlane.xlu1 %149 }
 0x1b0   :  { %v153_v59 = vsub.f32 %v118_v30, %v150_v57 }
 0x1b2   :  { %v154_v61 = vadd.f32 %v153_v59, %v152_v58 }
 0x1b3   :  { %v158_v4 = vpop.permute.xlu1 %157 }
 0x1b4   :  { %v167_v62 = vmul.f32 %v275_v60, %v154_v61  ;;  %280 = vrcp.f32 %v158_v4 }
 0x1b6   :  { %169 = vrot.lane.b32.xlu0 %v167_v62, %s287_s26 }
 0x1be   :  { %v281_v10 = vpop.eup %280 }
 0x1bf   :  { %v161_v12 = vmul.f32 %v281_v10, %v151_v11 }
 0x228   :  { %v170_v13 = vpop.permute.xlu0 %169 }
 0x229   :  { %v172_v14 = vadd.f32 %v170_v13, %v161_v12 }
 0x22b   :  { %174 = vrot.lane.b32.xlu0 %v172_v14, %s289_s1 }
 0x29d   :  { %v175_v15 = vpop.permute.xlu0 %174 }
 0x29e   :  { %178 = vst.msk [vmem:[%s383_s4] sm:$0xff] %vm177_vm5, %v175_v15 }

</bundles_post_ra>
